<compile_context>
chip_gen: v7x
topology: tpu7x:2x2x1
jax: 0.10.0
libtpu: 0.0.40
codegen_flags: <defaults>
</compile_context>

<pallas_src>
import functools

import jax
import jax.numpy as jnp
from jax.experimental import pallas as pl
from jax.experimental.pallas import tpu as pltpu


def _round_up(v, m):
    return ((v + m - 1) // m) * m


def _rgcn_layer_kernel(a_ref, xb_ref, xr_ref, w_ref, root_ref, bias_ref, o_ref,
                       *, apply_relu):
    """Grid = (row tiles, bases).  o_ref (f32) is the VMEM-resident accumulator."""
    b = pl.program_id(1)

    @pl.when(b == 0)
    def _init():
        # self-loop (root weight) term + bias, computed once per row tile
        o_ref[...] = (
            jnp.dot(xr_ref[...], root_ref[...], preferred_element_type=jnp.float32)
            + bias_ref[...]
        )

    # mean-aggregated neighbour features for basis b: (TM, N) @ (N, Cin), bf16 MXU, f32 acc
    agg = jnp.dot(a_ref[...], xb_ref[...], preferred_element_type=jnp.float32)
    # project with the basis weight: (TM, Cin) @ (Cin, Cout)
    # NOTE: if Cout << Cin one would compute (X @ basis_b) first so the N^2 matmul
    # contracts over the narrower side; with 128-padded channels both orderings cost the same.
    o_ref[...] += jnp.dot(agg, w_ref[...], preferred_element_type=jnp.float32)

    if apply_relu:
        @pl.when(b == pl.num_programs(1) - 1)
        def _relu():
            o_ref[...] = jnp.maximum(o_ref[...], 0.0)


def rgcn_layer(x, adj_b, basis, root, bias, *, apply_relu):
    """One RGCNConv layer (optionally fused with ReLU) as a Pallas call.

    x:      [N, Cin]        float32 node features
    adj_b:  [B, N, N]       comp-combined normalized adjacency  A'_b = sum_r comp[r,b] * A_r
    basis:  [B, Cin, Cout]  basis weights
    root:   [Cin, Cout]
    bias:   [Cout]
    """
    N, Cin = x.shape
    B = adj_b.shape[0]
    Cout = root.shape[1]

    # Lane-dense padding (zeros are inert: padded adjacency columns are zero and padded
    # channels only ever multiply zero weights; padded output rows are sliced off).
    n_p = _round_up(N, 128)
    cin_p = _round_up(Cin, 128)
    cout_p = _round_up(Cout, 128)
    tm = 256 if n_p % 256 == 0 else 128

    x_f32 = jnp.pad(x.astype(jnp.float32), ((0, n_p - N), (0, cin_p - Cin)))
    x_bf16 = x_f32.astype(jnp.bfloat16)
    adj_p = jnp.pad(adj_b.astype(jnp.float32),
                    ((0, 0), (0, n_p - N), (0, n_p - N))).astype(jnp.bfloat16)
    w_p = jnp.pad(basis.astype(jnp.float32),
                  ((0, 0), (0, cin_p - Cin), (0, cout_p - Cout)))
    root_p = jnp.pad(root.astype(jnp.float32),
                     ((0, cin_p - Cin), (0, cout_p - Cout)))
    bias_p = jnp.pad(bias.astype(jnp.float32), (0, cout_p - Cout)).reshape(1, cout_p)

    kernel = functools.partial(_rgcn_layer_kernel, apply_relu=apply_relu)

    flops = (B * (2 * n_p * n_p * cin_p + 2 * n_p * cin_p * cout_p)
             + 2 * n_p * cin_p * cout_p)
    bytes_accessed = (B * n_p * n_p * 2                      # bf16 adjacency (dominant)
                      + n_p * cin_p * (2 + 4)                # x in bf16 + f32
                      + B * cin_p * cout_p * 4               # basis weights
                      + cin_p * cout_p * 4 + cout_p * 4      # root + bias
                      + n_p * cout_p * 4)                    # output

    out_p = pl.pallas_call(
        kernel,
        out_shape=jax.ShapeDtypeStruct((n_p, cout_p), jnp.float32),
        grid_spec=pltpu.PrefetchScalarGridSpec(
            num_scalar_prefetch=0,
            grid=(n_p // tm, B),
            in_specs=[
                # adjacency row tile for basis b (bf16)
                pl.BlockSpec((pl.Squeezed(), tm, n_p), lambda i, b: (b, i, 0)),
                # full x in bf16, VMEM-resident across the whole grid (aggregation operand)
                pl.BlockSpec((n_p, cin_p), lambda i, b: (0, 0)),
                # row tile of x in f32 for the root-weight term
                pl.BlockSpec((tm, cin_p), lambda i, b: (i, 0)),
                # basis weight for basis b
                pl.BlockSpec((pl.Squeezed(), cin_p, cout_p), lambda i, b: (b, 0, 0)),
                # root weight and bias (resident)
                pl.BlockSpec((cin_p, cout_p), lambda i, b: (0, 0)),
                pl.BlockSpec((1, cout_p), lambda i, b: (0, 0)),
            ],
            out_specs=pl.BlockSpec((tm, cout_p), lambda i, b: (i, 0)),
        ),
        compiler_params=pltpu.CompilerParams(
            dimension_semantics=("parallel", "arbitrary")),
        cost_estimate=pl.CostEstimate(
            flops=flops, transcendentals=0, bytes_accessed=bytes_accessed),
    )(adj_p, x_bf16, x_f32, w_p, root_p, bias_p)

    return out_p[:N, :Cout]


def build_norm_adj(edge_index, edge_type, num_nodes, num_relations):
    """Dense per-relation adjacency with mean normalization over incoming edges."""
    src = edge_index[0]
    dst = edge_index[1]
    adj = jnp.zeros((num_relations, num_nodes, num_nodes), jnp.float32)
    adj = adj.at[edge_type, dst, src].add(1.0)
    deg = adj.sum(axis=-1, keepdims=True)
    return adj / jnp.maximum(deg, 1.0)


def init_rgcn_conv_params(key, in_ch, out_ch, num_relations, num_bases):
    k1, k2, k3, k4 = jax.random.split(key, 4)
    scale = 1.0 / jnp.sqrt(jnp.float32(in_ch))
    return {
        "basis": jax.random.normal(k1, (num_bases, in_ch, out_ch), jnp.float32) * scale,
        "comp": jax.random.normal(k2, (num_relations, num_bases), jnp.float32) * scale,
        "root": jax.random.normal(k3, (in_ch, out_ch), jnp.float32) * scale,
        "bias": jax.random.normal(k4, (out_ch,), jnp.float32) * 0.1,
    }


def rgcn_encoder_forward(params, x, edge_index, edge_type, num_relations):
    num_nodes = x.shape[0]
    # TODO(synk): sparse scatter-based message passing is realized as a dense [R, N, N]
    # normalized adjacency (fine here; the scalability limit for very large graphs).
    adj = build_norm_adj(edge_index, edge_type, num_nodes, num_relations)

    # Basis decomposition pushed onto the adjacency (plain-JAX glue):
    #   sum_r A_r X W_r == sum_b (sum_r comp[r,b] A_r) X basis_b
    adj_b1 = jnp.einsum("rb,rij->bij", params["conv1"]["comp"], adj)
    adj_b2 = jnp.einsum("rb,rij->bij", params["conv2"]["comp"], adj)

    h = rgcn_layer(x, adj_b1, params["conv1"]["basis"], params["conv1"]["root"],
                   params["conv1"]["bias"], apply_relu=True)      # conv1 + ReLU fused
    out = rgcn_layer(h, adj_b2, params["conv2"]["basis"], params["conv2"]["root"],
                     params["conv2"]["bias"], apply_relu=False)   # conv2
    return out


# ----------------------------- pure-JAX reference -----------------------------

def _ref_layer(x, adj, w, root, bias):
    agg = jnp.einsum("rij,jc->ric", adj, x)
    return jnp.einsum("ric,rco->io", agg, w) + x @ root + bias[None, :]


def _ref_forward(params, x, edge_index, edge_type, num_relations):
    adj = build_norm_adj(edge_index, edge_type, x.shape[0], num_relations)
    w1 = jnp.einsum("rb,bio->rio", params["conv1"]["comp"], params["conv1"]["basis"])
    w2 = jnp.einsum("rb,bio->rio", params["conv2"]["comp"], params["conv2"]["basis"])
    h = jnp.maximum(_ref_layer(x, adj, w1, params["conv1"]["root"], params["conv1"]["bias"]), 0.0)
    return _ref_layer(h, adj, w2, params["conv2"]["root"], params["conv2"]["bias"])


if __name__ == "__main__":
    # Small synthetic graph consistent with the module's forward signature.
    NUM_NODES = 16
    IN_CH = 8
    HIDDEN_CH = 16
    OUT_CH = 8
    NUM_RELATIONS = 4
    NUM_BASES = 2
    NUM_EDGES = 40

    key = jax.random.PRNGKey(0)
    kx, ke_src, ke_dst, ke_type, kp1, kp2 = jax.random.split(key, 6)

    x = jax.random.normal(kx, (NUM_NODES, IN_CH), jnp.float32)
    edge_index = jnp.stack([
        jax.random.randint(ke_src, (NUM_EDGES,), 0, NUM_NODES),
        jax.random.randint(ke_dst, (NUM_EDGES,), 0, NUM_NODES),
    ], axis=0)
    edge_type = jax.random.randint(ke_type, (NUM_EDGES,), 0, NUM_RELATIONS)

    params = {
        "conv1": init_rgcn_conv_params(kp1, IN_CH, HIDDEN_CH, NUM_RELATIONS, NUM_BASES),
        "conv2": init_rgcn_conv_params(kp2, HIDDEN_CH, OUT_CH, NUM_RELATIONS, NUM_BASES),
    }

    out = rgcn_encoder_forward(params, x, edge_index, edge_type, NUM_RELATIONS)
    out = jax.block_until_ready(out)

    ref = _ref_forward(params, x, edge_index, edge_type, NUM_RELATIONS)
    assert out.shape == (NUM_NODES, OUT_CH)
    # Kernel runs the adjacency path in bf16 (f32 accumulation); allow the expected
    # ~1e-3..1e-2 drift vs. the pure-f32 reference.
    assert jnp.allclose(out, ref, rtol=3e-2, atol=3e-2), "mismatch vs JAX reference"

    print("KERNEL_OK")
</pallas_src>

<mosaic_0001>
module attributes {stable_mosaic.version = 11 : i64} {
  func.func @_rgcn_layer_kernel(%arg0: i32, %arg1: i32, %arg2: memref<1x128x128xbf16, #tpu.memory_space<vmem>>, %arg3: memref<128x128xbf16, #tpu.memory_space<vmem>>, %arg4: memref<128x128xf32, #tpu.memory_space<vmem>>, %arg5: memref<1x128x128xf32, #tpu.memory_space<vmem>>, %arg6: memref<128x128xf32, #tpu.memory_space<vmem>>, %arg7: memref<1x128xf32, #tpu.memory_space<vmem>>, %arg8: memref<128x128xf32, #tpu.memory_space<vmem>>) attributes {dimension_semantics = [#tpu.dimension_semantics<parallel>, #tpu.dimension_semantics<arbitrary>], iteration_bounds = array<i64: 1, 2>, scalar_prefetch = 0 : i64, scratch_operands = 0 : i64, tpu.core_type = #tpu.core_type<tc>, window_params = [{transform_indices = @transform_0, window_bounds = array<i64: 1, 128, 128>}, {pipeline_mode = #tpu.pipeline_mode<synchronous>, transform_indices = @transform_1, window_bounds = array<i64: 128, 128>}, {transform_indices = @transform_2, window_bounds = array<i64: 128, 128>}, {transform_indices = @transform_3, window_bounds = array<i64: 1, 128, 128>}, {pipeline_mode = #tpu.pipeline_mode<synchronous>, transform_indices = @transform_4, window_bounds = array<i64: 128, 128>}, {pipeline_mode = #tpu.pipeline_mode<synchronous>, transform_indices = @transform_5, window_bounds = array<i64: 1, 128>}, {transform_indices = @transform_6, window_bounds = array<i64: 128, 128>}]} {
    %c0_i32 = arith.constant 0 : i32
    %0 = arith.cmpi eq, %arg1, %c0_i32 : i32
    %1 = arith.extui %0 : i1 to i32
    %c0_i32_0 = arith.constant 0 : i32
    %2 = arith.cmpi ne, %1, %c0_i32_0 : i32
    scf.if %2 {
      %c0_14 = arith.constant 0 : index
      %c0_15 = arith.constant 0 : index
      %16 = vector.load %arg4[%c0_14, %c0_15] : memref<128x128xf32, #tpu.memory_space<vmem>>, vector<128x128xf32>
      %c0_16 = arith.constant 0 : index
      %c0_17 = arith.constant 0 : index
      %17 = vector.load %arg6[%c0_16, %c0_17] : memref<128x128xf32, #tpu.memory_space<vmem>>, vector<128x128xf32>
      %cst_18 = arith.constant dense<0.000000e+00> : vector<128x128xf32>
      %18 = tpu.matmul %16, %17, %cst_18 {dimension_numbers = #tpu.dot_dimension_numbers<[1], [0], [0], [1], [0, 0, 1, 1], [], []>} : vector<128x128xf32>, vector<128x128xf32>, vector<128x128xf32> -> vector<128x128xf32>
      %c0_19 = arith.constant 0 : index
      %c0_20 = arith.constant 0 : index
      %19 = vector.load %arg7[%c0_19, %c0_20] : memref<1x128xf32, #tpu.memory_space<vmem>>, vector<1x128xf32>
      %20 = vector.broadcast %19 : vector<1x128xf32> to vector<128x128xf32>
      %21 = arith.addf %18, %20 : vector<128x128xf32>
      %c0_21 = arith.constant 0 : index
      %c0_22 = arith.constant 0 : index
      %22 = vector.load %arg8[%c0_21, %c0_22] : memref<128x128xf32, #tpu.memory_space<vmem>>, vector<128x128xf32>
      tpu.vector_store %arg8[%c0_21, %c0_22], %21 {strides = array<i32>} : memref<128x128xf32, #tpu.memory_space<vmem>>, vector<128x128xf32>,
    } else {
    }
    %c0 = arith.constant 0 : index
    %c0_1 = arith.constant 0 : index
    %c0_2 = arith.constant 0 : index
    %3 = vector.load %arg2[%c0, %c0_1, %c0_2] : memref<1x128x128xbf16, #tpu.memory_space<vmem>>, vector<1x128x128xbf16>
    %4 = vector.shape_cast %3 : vector<1x128x128xbf16> to vector<128x128xbf16>
    %c0_3 = arith.constant 0 : index
    %c0_4 = arith.constant 0 : index
    %5 = vector.load %arg3[%c0_3, %c0_4] : memref<128x128xbf16, #tpu.memory_space<vmem>>, vector<128x128xbf16>
    %cst = arith.constant dense<0.000000e+00> : vector<128x128xf32>
    %6 = tpu.matmul %4, %5, %cst {dimension_numbers = #tpu.dot_dimension_numbers<[1], [0], [0], [1], [0, 0, 1, 1], [], []>} : vector<128x128xbf16>, vector<128x128xbf16>, vector<128x128xf32> -> vector<128x128xf32>
    %c0_5 = arith.constant 0 : index
    %c0_6 = arith.constant 0 : index
    %7 = vector.load %arg8[%c0_5, %c0_6] : memref<128x128xf32, #tpu.memory_space<vmem>>, vector<128x128xf32>
    %c0_7 = arith.constant 0 : index
    %c0_8 = arith.constant 0 : index
    %c0_9 = arith.constant 0 : index
    %8 = vector.load %arg5[%c0_7, %c0_8, %c0_9] : memref<1x128x128xf32, #tpu.memory_space<vmem>>, vector<1x128x128xf32>
    %9 = vector.shape_cast %8 : vector<1x128x128xf32> to vector<128x128xf32>
    %cst_10 = arith.constant dense<0.000000e+00> : vector<128x128xf32>
    %10 = tpu.matmul %6, %9, %cst_10 {dimension_numbers = #tpu.dot_dimension_numbers<[1], [0], [0], [1], [0, 0, 1, 1], [], []>} : vector<128x128xf32>, vector<128x128xf32>, vector<128x128xf32> -> vector<128x128xf32>
    %11 = arith.addf %7, %10 : vector<128x128xf32>
    %c0_11 = arith.constant 0 : index
    %c0_12 = arith.constant 0 : index
    %12 = vector.load %arg8[%c0_11, %c0_12] : memref<128x128xf32, #tpu.memory_space<vmem>>, vector<128x128xf32>
    tpu.vector_store %arg8[%c0_11, %c0_12], %11 {strides = array<i32>} : memref<128x128xf32, #tpu.memory_space<vmem>>, vector<128x128xf32>,
    %c1_i32 = arith.constant 1 : i32
    %13 = arith.cmpi eq, %arg1, %c1_i32 : i32
    %14 = arith.extui %13 : i1 to i32
    %c0_i32_13 = arith.constant 0 : i32
    %15 = arith.cmpi ne, %14, %c0_i32_13 : i32
    scf.if %15 {
      %c0_14 = arith.constant 0 : index
      %c0_15 = arith.constant 0 : index
      %16 = vector.load %arg8[%c0_14, %c0_15] : memref<128x128xf32, #tpu.memory_space<vmem>>, vector<128x128xf32>
      %cst_16 = arith.constant 0.000000e+00 : f32
      %17 = vector.broadcast %cst_16 : f32 to vector<128x128xf32>
      %18 = arith.maximumf %16, %17 : vector<128x128xf32>
      %c0_17 = arith.constant 0 : index
      %c0_18 = arith.constant 0 : index
      %19 = vector.load %arg8[%c0_17, %c0_18] : memref<128x128xf32, #tpu.memory_space<vmem>>, vector<128x128xf32>
      tpu.vector_store %arg8[%c0_17, %c0_18], %18 {strides = array<i32>} : memref<128x128xf32, #tpu.memory_space<vmem>>, vector<128x128xf32>,
    } else {
    }
    return
  }
  func.func @transform_0(%arg0: i32, %arg1: i32) -> (i32, i32, i32) {
    %c0_i32 = arith.constant 0 : i32
    %c0_i32_0 = arith.constant 0 : i32
    return %arg1, %arg0, %c0_i32 : i32, i32, i32
  }
  func.func @transform_1(%arg0: i32, %arg1: i32) -> (i32, i32) {
    %c0_i32 = arith.constant 0 : i32
    %c0_i32_0 = arith.constant 0 : i32
    %c0_i32_1 = arith.constant 0 : i32
    return %c0_i32, %c0_i32_0 : i32, i32
  }
  func.func @transform_2(%arg0: i32, %arg1: i32) -> (i32, i32) {
    %c0_i32 = arith.constant 0 : i32
    %c0_i32_0 = arith.constant 0 : i32
    return %arg0, %c0_i32 : i32, i32
  }
  func.func @transform_3(%arg0: i32, %arg1: i32) -> (i32, i32, i32) {
    %c0_i32 = arith.constant 0 : i32
    %c0_i32_0 = arith.constant 0 : i32
    %c0_i32_1 = arith.constant 0 : i32
    return %arg1, %c0_i32, %c0_i32_0 : i32, i32, i32
  }
  func.func @transform_4(%arg0: i32, %arg1: i32) -> (i32, i32) {
    %c0_i32 = arith.constant 0 : i32
    %c0_i32_0 = arith.constant 0 : i32
    %c0_i32_1 = arith.constant 0 : i32
    return %c0_i32, %c0_i32_0 : i32, i32
  }
  func.func @transform_5(%arg0: i32, %arg1: i32) -> (i32, i32) {
    %c0_i32 = arith.constant 0 : i32
    %c0_i32_0 = arith.constant 0 : i32
    %c0_i32_1 = arith.constant 0 : i32
    return %c0_i32, %c0_i32_0 : i32, i32
  }
  func.func @transform_6(%arg0: i32, %arg1: i32) -> (i32, i32) {
    %c0_i32 = arith.constant 0 : i32
    %c0_i32_0 = arith.constant 0 : i32
    return %arg0, %c0_i32 : i32, i32
  }
}

</mosaic_0001>

<bundles_post_ra>
// kernel: tpu_custom_call.1
= control target key start
LH: loop header
LB: loop body
LE: loop exit
PB: predicated region body
PF: predicated region fallthrough
CT: control target
= control target key end

     0   :  { %s2266_s0 = inlined_call_operand.hbm [shape: bf16[2,128,128], index: 0, kind: input, shape index: {}]   ;;  %s2267_s1 = inlined_call_operand.hbm [shape: bf16[128,128], index: 1, kind: input, shape index: {}]   ;;  %s2268_s2 = inlined_call_operand.hbm [shape: f32[128,128], index: 2, kind: input, shape index: {}]   ;;  %s2269_s3 = inlined_call_operand.hbm [shape: f32[2,128,128], index: 3, kind: input, shape index: {}]   ;;  %s2270_s4 = inlined_call_operand.hbm [shape: f32[128,128], index: 4, kind: input, shape index: {}]   ;;  %s2271_s5 = inlined_call_operand.vmem [shape: f32[1,128], index: 5, kind: input, shape index: {}]   ;;  %s2272_s6 = inlined_call_operand.hbm [shape: f32[128,128], index: 6, kind: output, shape index: {}]  }
   0x1   :  { %2279 = sst [smem:[#allocation17_spill]] %s2266_s0 }
   0x2   :  { %2280 = sst [smem:[#allocation18_spill]] %s2267_s1 }
   0x3   :  { %2281 = sst [smem:[#allocation19_spill]] %s2272_s6 }
   0x4   :  { %11 = vsyncpa [#allocation3], 0 }
   0x5   :  { %13 = vsyncpa [#allocation3 + $0x1], 0 }
   0x6   :  { %14 = vsyncpa [#allocation6], 0 }
   0x7   :  { %15 = vsyncpa [#allocation9], 0 }
   0x8   :  { %17 = vsyncpa [#allocation9 + $0x1], 0 }
   0x9   :  { %18 = vsyncpa [#allocation4], 0  ;;  %s1945_s21 = smov 0   ;;  %s1947_s22 = smov 0  }
   0xa   :  { %s1949_s23 = smov 0   ;;  %s1951_s24 = smov 0  }
   0xb   :  { %s1953_s25 = smov 0   ;;  %s1955_s26 = smov 0  }
   0xc LB: > { %s1974_s27 = sadd.s32 4294967295, %s1896_s26   ;;  %p58_p0 = scmp.ne.s32.totalorder %s1880_s22, %s1876_s21  ;;  %s1896_s26 = sphi %s1955_s26, %s24_s26   ;;  %s1892_s25 = sphi %s1953_s25, %s2303_s25   ;;  %s1888_s24 = sphi %s1951_s24, %s2302_s24   ;;  %s1884_s23 = sphi %s1949_s23, %s2301_s23   ;;  %s1880_s22 = sphi %s1947_s22, %s2300_s22   ;;  %s1876_s21 = sphi %s1945_s21, %s2299_s21  }
   0xd   : > { %p2273_p1 = scmp.eq.s32.totalorder %s1974_s27, 0  ;;  %p1194_p2 = scmp.ge.s32.totalorder %s1896_s26, 1 }
   0xe   : > { %p210_p3 = scmp.lt.s32.totalorder %s1896_s26, 3  ;;  %s1898_s30 = smov [#allocation5]  }
   0xf   : > { %p1982_p4 = por %p2273_p1, %p58_p0  ;;  %s222_s7 = sshll.u32 %s1898_s30, 4  ;;  %s223_s7 = int_to_ptr.vmem [resolvable:$true] %s222_s7 }
  0x10   : > { %p1986_p5 = pnand %p1194_p2, %p210_p3  ;;  %s1899_s9 = smov [#allocation10]  }
  0x11   : > { %s2282_s28 = scalar_select %p1982_p4, 1, 0 }
  0x12   : > { %s2283_s29 = scalar_select %p1986_p5, 1, 0 }
  0x13   : > { %p1560_p6 = pneg %p1986_p5  ;;  %s251_s10 = sshll.u32 %s1899_s9, 4  ;;  %s252_s10 = int_to_ptr.vmem [resolvable:$true] %s251_s10 }
  0x14   : > { %s2285_s1 = sld [smem:[#allocation18_spill]] }
  0x15   : > { %p1994_p7 = pnand %p1560_p6, %p2273_p1 }
  0x17   : > { %p2006_p9 = pneg %p1994_p7 }
  0x1a   : > { %s1660_s13 = scalar_lea.hbm %s2285_s1, 1024 }
  0x1b   : > { %p1661_p8 = scmp.ne.s32.totalorder %s2285_s1, %s1660_s13  ;;  %p1667_p12 = scmp.lt.u32.totalorder %s1660_s13, %s2285_s1 }
  0x1d   : > { %p1663_p10 = pnand %p2006_p9, %p1661_p8 }
  0x1f   : > { %p1664_p11 = pneg %p1663_p10 }
  0x21   : > { %p1669_p13 = pnand %p1667_p12, %p1664_p11 }
  0x23   : > { %1672 = shalt.err (!%p1669_p13)
}
  0x24   : > { %s1673_s19 = scalar_lea.vmem %s223_s7, 1024  ;;  %p1681_p6 = scmp.lt.s32.totalorder %s223_s7, %s223_s7 }
  0x25   : > { %p1674_p0 = scmp.ne.s32.totalorder %s223_s7, %s1673_s19  ;;  %p1682_p1 = scmp.lt.s32.totalorder %s1673_s19, %s1673_s19 }
  0x27   : > { %p1676_p2 = pnand %p1674_p0, %p2006_p9  ;;  %p1683_p4 = por %p1682_p1, %p1681_p6 }
  0x29   : > { %p1677_p3 = pneg %p1676_p2 }
  0x2b   : > { %p1684_p5 = pnand %p1683_p4, %p1677_p3 }
  0x2d   : > { %1687 = shalt.err (!%p1684_p5)
}
  0x2e   : > { %s1900_s20 = smov 64   ;;  %s1901_s21 = smov 4  }
  0x2f   : > { %1563 = dma.hbm_to_vmem [thread:$0]  (!%p1994_p7), %s2285_s1, 1024, %s223_s7, [#allocation6], %s1900_s20, %s1900_s20, %s1901_s21  }
  0x30   : > { %s1902_s11 = smov [#allocation7]   ;;  %s1688_s15 = scalar_lea.hbm %s2270_s4, 2048 }
  0x31   : > { %s238_s12 = sshll.u32 %s1902_s11, 4  ;;  %p1689_p1 = scmp.ne.s32.totalorder %s2270_s4, %s1688_s15  ;;  %s239_s12 = int_to_ptr.vmem [resolvable:$true] %s238_s12 }
  0x32   : > { %p1695_p8 = scmp.lt.u32.totalorder %s1688_s15, %s2270_s4 }
  0x33   : > { %p1691_p4 = pnand %p1689_p1, %p2006_p9 }
  0x35   : > { %p1692_p5 = pneg %p1691_p4 }
  0x37   : > { %p1697_p10 = pnand %p1695_p8, %p1692_p5 }
  0x39   : > { %1700 = shalt.err (!%p1697_p10)
}
  0x3a   : > { %s1701_s7 = scalar_lea.vmem %s252_s10, 2048  ;;  %p1709_p0 = scmp.lt.s32.totalorder %s252_s10, %s252_s10 }
  0x3b   : > { %p1702_p11 = scmp.ne.s32.totalorder %s252_s10, %s1701_s7  ;;  %p1710_p2 = scmp.lt.s32.totalorder %s1701_s7, %s1701_s7 }
  0x3d   : > { %p1704_p12 = pnand %p1702_p11, %p2006_p9  ;;  %p1711_p3 = por %p1710_p2, %p1709_p0 }
  0x3f   : > { %p1705_p13 = pneg %p1704_p12 }
  0x41   : > { %p1712_p6 = pnand %p1711_p3, %p1705_p13 }
  0x43   : > { %1715 = shalt.err (!%p1712_p6)
}
  0x44   : > { %s2277_s30 = smov 128   ;;  %s2278_s9 = smov 8  }
  0x45   : > { %1569 = dma.hbm_to_vmem [thread:$0]  (!%p1994_p7), %s2270_s4, 2048, %s252_s10, [#allocation9], %s2277_s30, %s2277_s30, %s2278_s9  }
  0x46   : > { %s1716_s15 = scalar_lea.hbm %s2268_s2, 2048 }
  0x47   : > { %p1717_p1 = scmp.ne.s32.totalorder %s2268_s2, %s1716_s15  ;;  %p1723_p8 = scmp.lt.u32.totalorder %s1716_s15, %s2268_s2 }
  0x49   : > { %p1719_p4 = pnand %p1717_p1, %p2006_p9 }
  0x4b   : > { %p1720_p5 = pneg %p1719_p4 }
  0x4d   : > { %p1725_p10 = pnand %p1723_p8, %p1720_p5 }
  0x4f   : > { %1728 = shalt.err (!%p1725_p10)
}
  0x50   : > { %s1729_s6 = scalar_lea.vmem %s239_s12, 2048  ;;  %p1737_p0 = scmp.lt.s32.totalorder %s239_s12, %s239_s12 }
  0x51   : > { %p1730_p11 = scmp.ne.s32.totalorder %s239_s12, %s1729_s6  ;;  %p1738_p2 = scmp.lt.s32.totalorder %s1729_s6, %s1729_s6 }
  0x53   : > { %p1732_p12 = pnand %p1730_p11, %p2006_p9  ;;  %p1739_p3 = por %p1738_p2, %p1737_p0 }
  0x55   : > { %p1733_p13 = pneg %p1732_p12 }
  0x57   : > { %p1740_p6 = pnand %p1739_p3, %p1733_p13 }
  0x59   : > { %1743 = shalt.err (!%p1740_p6)
}
  0x5a   : > { %1566 = dma.hbm_to_vmem [thread:$0]  (!%p1994_p7), %s2268_s2, 2048, %s239_s12, [#allocation6], %s2277_s30, %s2277_s30, %s2278_s9  }
  0x5b   : > { %s45_s16 = sadd.s32 1, %s1884_s23  ;;  %s33_s13 = sadd.s32 1, %s1892_s25 }
  0x5c   : > { %p52_p9 = scmp.ne.s32.totalorder %s1884_s23, %s1880_s22  ;;  %p34_p1 = scmp.ge.s32.totalorder %s33_s13, 2 }
  0x5d   : > { %p53_p4 = scmp.eq.s32.totalorder %s1896_s26, 0  ;;  %p1580_p5 = scmp.lt.s32.totalorder %s1896_s26, 2 }
  0x5e   : > { %s2074_s8 = sand.u32 1, %s1884_s23   ;;  %s2305_s13 = smov (%p34_p1, %s33_s13), 0 }
  0x5f   : > { %p54_p8 = por %p53_p4, %p52_p9  ;;  %s40_s14 = ssub.s32 %s1892_s25, %s2305_s13 }
  0x60   : > { %s1199_s12 = sshll.u32 %s2074_s8, 6  ;;  %p43_p7 = scmp.eq.s32.totalorder %s40_s14, 0 }
  0x61   : > { %s1234_s15 = sshll.u32 %s1892_s25, 10  ;;  %s272_s17 = scalar_lea.vmem [#allocation2], %s1199_s12 }
  0x62   : > { %s281_s18 = sshll.u32 %s272_s17, 4  ;;  %s2287_s0 = sld [smem:[#allocation17_spill]]  ;;  %s2090_s18 = int_to_ptr.vmem [resolvable:$true] %s281_s18 }
  0x63   : > { %s2083_s19 = scalar_select %p43_p7, %s1884_s23, %s45_s16  }
  0x64   : > { %p2094_p10 = pnand %p1580_p5, %p54_p8  ;;  %s1202_s14 = sshll.u32 %s2074_s8, 7 }
  0x65   : > { %s269_s12 = scalar_lea.sflag [#allocation3], %s2074_s8 }
  0x66   : > { %p1746_p12 = pneg %p2094_p10 }
  0x68   : > { %s2088_s10 = scalar_lea.hbm %s2287_s0, %s1234_s15  ;;  %s1749_s6 = scalar_lea.hbm %s2287_s0, 2048 }
  0x69   : > { %s1744_s17 = scalar_lea.hbm %s2088_s10, 1024  ;;  %p1750_p2 = scmp.lt.u32.totalorder %s2088_s10, %s2287_s0 }
  0x6a   : > { %p1745_p11 = scmp.ne.s32.totalorder %s2088_s10, %s1744_s17  ;;  %p1751_p3 = scmp.lt.u32.totalorder %s1749_s6, %s1744_s17 }
  0x6b   : > { %p1753_p9 = scmp.lt.u32.totalorder %s1744_s17, %s2088_s10 }
  0x6c   : > { %p1747_p13 = pnand %p1746_p12, %p1745_p11  ;;  %p1752_p6 = por %p1751_p3, %p1750_p2 }
  0x6e   : > { %p1748_p0 = pneg %p1747_p13  ;;  %p1754_p1 = por %p1753_p9, %p1752_p6 }
  0x70   : > { %p1755_p4 = pnand %p1754_p1, %p1748_p0 }
  0x72   : > { %1758 = shalt.err (!%p1755_p4)
}
  0x73   : > { %s1759_s16 = scalar_lea.vmem %s2090_s18, 1024  ;;  %s1905_s15 = smov [#allocation2]  }
  0x74   : > { %p1760_p5 = scmp.ne.s32.totalorder %s2090_s18, %s1759_s16  ;;  %s1764_s7 = sshll.u32 %s1905_s15, 4  ;;  %s1765_s7 = int_to_ptr.vmem [resolvable:$false] %s1764_s7 }
  0x75   : > { %s1766_s30 = scalar_lea.vmem %s1765_s7, 2048  ;;  %p1767_p11 = scmp.lt.s32.totalorder %s2090_s18, %s1765_s7 }
  0x76   : > { %p1762_p8 = pnand %p1760_p5, %p1746_p12  ;;  %p1768_p13 = scmp.lt.s32.totalorder %s1766_s30, %s1759_s16 }
  0x78   : > { %p1763_p7 = pneg %p1762_p8  ;;  %p1769_p2 = por %p1768_p13, %p1767_p11 }
  0x7a   : > { %p1770_p3 = pnand %p1769_p2, %p1763_p7 }
  0x7c   : > { %1773 = shalt.err (!%p1770_p3)
}
  0x7d   : > { %1573 = dma.hbm_to_vmem [thread:$0]  (!%p2094_p10), %s2088_s10, 1024, %s2090_s18, %s269_s12, %s1900_s20, %s1900_s20, %s1901_s21  }
  0x7e   : > { %s1235_s9 = sshll.u32 %s1892_s25, 11  ;;  %s295_s16 = scalar_lea.vmem [#allocation8], %s1202_s14 }
  0x7f   : > { %s302_s17 = sshll.u32 %s295_s16, 4  ;;  %s2137_s7 = scalar_lea.hbm %s2269_s3, %s1235_s9  ;;  %s2139_s17 = int_to_ptr.vmem [resolvable:$true] %s302_s17 }
  0x80   : > { %s2289_s30 = sand.u32 1, %s1896_s26   ;;  %s1774_s1 = scalar_lea.hbm %s2137_s7, 2048 }
  0x81   : > { %s2143_s0 = scalar_lea.sflag [#allocation9], %s2289_s30  ;;  %p1775_p0 = scmp.ne.s32.totalorder %s2137_s7, %s1774_s1 }
  0x82   : > { %s1779_s8 = scalar_lea.hbm %s2269_s3, 4096  ;;  %p1780_p1 = scmp.lt.u32.totalorder %s2137_s7, %s2269_s3 }
  0x83   : > { %p1777_p6 = pnand %p1775_p0, %p1746_p12  ;;  %p1781_p4 = scmp.lt.u32.totalorder %s1779_s8, %s1774_s1 }
  0x84   : > { %p1783_p8 = scmp.lt.u32.totalorder %s1774_s1, %s2137_s7 }
  0x85   : > { %p1778_p9 = pneg %p1777_p6  ;;  %p1782_p5 = por %p1781_p4, %p1780_p1 }
  0x87   : > { %p1784_p7 = por %p1783_p8, %p1782_p5 }
  0x89   : > { %p1785_p11 = pnand %p1784_p7, %p1778_p9 }
  0x8b   : > { %1788 = shalt.err (!%p1785_p11)
}
  0x8c   : > { %s1789_s14 = scalar_lea.vmem %s2139_s17, 2048  ;;  %s1906_s12 = smov [#allocation8]  }
  0x8d   : > { %p1790_p13 = scmp.ne.s32.totalorder %s2139_s17, %s1789_s14  ;;  %s1794_s9 = sshll.u32 %s1906_s12, 4  ;;  %s1795_s9 = int_to_ptr.vmem [resolvable:$false] %s1794_s9 }
  0x8e   : > { %s1796_s16 = scalar_lea.vmem %s1795_s9, 4096  ;;  %p1797_p0 = scmp.lt.s32.totalorder %s2139_s17, %s1795_s9 }
  0x8f   : > { %p1792_p2 = pnand %p1790_p13, %p1746_p12  ;;  %p1798_p6 = scmp.lt.s32.totalorder %s1796_s16, %s1789_s14 }
  0x91   : > { %p1793_p3 = pneg %p1792_p2  ;;  %p1799_p1 = por %p1798_p6, %p1797_p0 }
  0x93   : > { %p1800_p4 = pnand %p1799_p1, %p1793_p3 }
  0x95   : > { %1803 = shalt.err (!%p1800_p4)
}
  0x96   : > { %s2290_s1 = smov 8   ;;  %s2291_s6 = smov 128  }
  0x97   : > { %1576 = dma.hbm_to_vmem [thread:$0]  (!%p2094_p10), %s2137_s7, 2048, %s2139_s17, %s2143_s0, %s2291_s6, %s2291_s6, %s2290_s1  }
  0x98   : > { %p2292_p12 = scmp.ne.s32.totalorder %s2283_s29, 0 }
  0x99   : > { %s316_s15 = sand.u32 (!%p2292_p12), 1, %s1880_s22   ;;  %p2293_p9 = scmp.ne.s32.totalorder (!%p2292_p12), %s2282_s28, 0 }
  0x9a   : > { %314 = sbr.rel (%p2292_p12) target bundleno = 969 (0x3c9), region = 44  ;;  %s1206_s30 = sshll.u32 (!%p2292_p12), %s316_s15, 6 }
  0x9b   : > { %s317_s20 = scalar_lea.sflag (!%p2292_p12), [#allocation3], %s316_s15  ;;  %s2175_s21 = scalar_lea.vmem (!%p2292_p12), [#allocation2], %s1206_s30 }
  0xa1   : > { %1855 = dma.done.wait (%p2293_p9), %s317_s20, 1024  }
  0xa2   : > { %1857 = vsyncadd (%p2293_p9), %s317_s20, 4294966272  ;;  %p2294_p5 = scmp.eq.s32.totalorder %s1974_s27, 0 }
  0xa4   : > { %1859 = dma.done.wait (%p2294_p5), [#allocation6], 3072   ;;  %p2295_p10 = pmov %p2294_p5 }
  0xa5   : > { %s333_s0 = sand.u32 1, %s1974_s27   ;;  %s1209_s29 = sshll.u32 %s316_s15, 7 }
  0xa6   : > { %1861 = vsyncadd (%p2295_p10), [#allocation6], 4294964224  ;;  %s334_s11 = scalar_lea.sflag [#allocation9], %s333_s0  ;;  %s2186_s17 = scalar_lea.vmem [#allocation8], %s1209_s29 }
  0xa7   : > { %1863 = dma.done.wait (%p2293_p9), %s334_s11, 2048  }
  0xa8   : > { %1865 = vsyncadd (%p2293_p9), %s334_s11, 4294965248  ;;  %p2296_p8 = pmov %p2294_p5 }
  0xa9   : > { %p2297_p7 = pmov %p2294_p5 }
  0xaa   : > { %1867 = dma.done.wait (%p2296_p8), [#allocation9], 2048  }
  0xab   : > { %1869 = vsyncadd (%p2297_p7), [#allocation9], 4294965248  ;;  %p1211_p11 = scmp.ne.s32.totalorder %s1888_s24, 0 }
  0xac   : > { %v394_v0 = vld [vmem:[#allocation10] sm:$0xff] (!%p1211_p11)  ;;  %v395_v1 = vld [vmem:[#allocation10 + $0x8] sm:$0xff] (!%p1211_p11)  ;;  %v396_v2 = vld [vmem:[#allocation10 + $0x10] sm:$0xff] (!%p1211_p11) }
  0xad   : > { %377 = sbr.rel (%p1211_p11) target bundleno = 435 (0x1b3), region = 68  ;;  %v1460_v3 = vpack.c.bf16 (!%p1211_p11), %v395_v1, %v394_v0  ;;  %v397_v4 = vld [vmem:[#allocation10 + $0x18] sm:$0xff] (!%p1211_p11)  ;;  %v398_v6 = vld [vmem:[#allocation10 + $0x20] sm:$0xff] (!%p1211_p11)  ;;  %v399_v7 = vld [vmem:[#allocation10 + $0x28] sm:$0xff] (!%p1211_p11) }
  0xae   : > { %v1464_v5 = vpack.c.bf16 (!%p1211_p11), %v397_v4, %v396_v2  ;;  %v1468_v8 = vpack.c.bf16 (!%p1211_p11), %v399_v7, %v398_v6  ;;  %v378_v9 = vld [vmem:[#allocation7] sm:$0xff] (!%p1211_p11)  ;;  %v400_v11 = vld [vmem:[#allocation10 + $0x30] sm:$0xff] (!%p1211_p11)  ;;  %v401_v12 = vld [vmem:[#allocation10 + $0x38] sm:$0xff] (!%p1211_p11) }
  0xaf   : > { %1461 = vmatprep.subr.bf16.mxu0 (!%p1211_p11), %v1460_v3  ;;  %1524 = vmatprep.subr.bf16.mxu1 (!%p1211_p11), %v1460_v3  ;;  %v386_v10 = vld [vmem:[#allocation7 + $0x40] sm:$0xff] (!%p1211_p11)  ;;  %v1472_v13 = vpack.c.bf16 (!%p1211_p11), %v401_v12, %v400_v11  ;;  %v403_v15 = vld [vmem:[#allocation10 + $0x48] sm:$0xff] (!%p1211_p11)  ;;  %v404_v17 = vld [vmem:[#allocation10 + $0x50] sm:$0xff] (!%p1211_p11) }
  0xb0   : > { %1463 = vmatpush3.bf16.msra.mxu0 (!%p1211_p11), %v1460_v3  ;;  %1532 = vmatpush3.bf16.msra.mxu1 (!%p1211_p11), %v1460_v3  ;;  %v402_v14 = vld [vmem:[#allocation10 + $0x40] sm:$0xff] (!%p1211_p11)  ;;  %v405_v18 = vld [vmem:[#allocation10 + $0x58] sm:$0xff] (!%p1211_p11)  ;;  %v407_v21 = vld [vmem:[#allocation10 + $0x68] sm:$0xff] (!%p1211_p11) }
  0xb1   : > { %1465 = vmatprep.subr.bf16.mxu0 (!%p1211_p11), %v1464_v5  ;;  %1525 = vmatprep.subr.bf16.mxu1 (!%p1211_p11), %v1464_v5  ;;  %v1476_v16 = vpack.c.bf16 (!%p1211_p11), %v403_v15, %v402_v14  ;;  %v1480_v19 = vpack.c.bf16 (!%p1211_p11), %v405_v18, %v404_v17  ;;  %v406_v20 = vld [vmem:[#allocation10 + $0x60] sm:$0xff] (!%p1211_p11)  ;;  %v408_v23 = vld [vmem:[#allocation10 + $0x70] sm:$0xff] (!%p1211_p11)  ;;  %v409_v24 = vld [vmem:[#allocation10 + $0x78] sm:$0xff] (!%p1211_p11) }
  0xb2   : > { %1348 = vmatprep.mubr.f32.mxu0 (!%p1211_p11), %v378_v9  ;;  %1360 = vmatprep.mubr.f32.mxu1 (!%p1211_p11), %v386_v10  ;;  %v1484_v22 = vpack.c.bf16 (!%p1211_p11), %v407_v21, %v406_v20  ;;  %v1488_v25 = vpack.c.bf16 (!%p1211_p11), %v409_v24, %v408_v23  ;;  %v379_v26 = vld [vmem:[#allocation7 + $0x8] sm:$0xff] (!%p1211_p11)  ;;  %v380_v28 = vld [vmem:[#allocation7 + $0x10] sm:$0xff] (!%p1211_p11)  ;;  %v381_v30 = vld [vmem:[#allocation7 + $0x18] sm:$0xff] (!%p1211_p11) }
  0xb3   : > { %v387_v27 = vld [vmem:[#allocation7 + $0x48] sm:$0xff] (!%p1211_p11)  ;;  %v388_v29 = vld [vmem:[#allocation7 + $0x50] sm:$0xff] (!%p1211_p11)  ;;  %v389_v31 = vld [vmem:[#allocation7 + $0x58] sm:$0xff] (!%p1211_p11) }
  0xb4   : > { %1467 = vmatpush3.bf16.msra.mxu0 %v1464_v5  ;;  %1533 = vmatpush3.bf16.msra.mxu1 %v1464_v5  ;;  %v382_v32 = vld [vmem:[#allocation7 + $0x20] sm:$0xff]  ;;  %v383_v34 = vld [vmem:[#allocation7 + $0x28] sm:$0xff]  ;;  %v384_v36 = vld [vmem:[#allocation7 + $0x30] sm:$0xff] }
  0xb5   : > { %1469 = vmatprep.subr.bf16.mxu0 %v1468_v8  ;;  %1526 = vmatprep.subr.bf16.mxu1 %v1468_v8  ;;  %v390_v33 = vld [vmem:[#allocation7 + $0x60] sm:$0xff]  ;;  %v391_v35 = vld [vmem:[#allocation7 + $0x68] sm:$0xff]  ;;  %v392_v37 = vld [vmem:[#allocation7 + $0x70] sm:$0xff] }
  0xb6   : > { %v385_v38 = vld [vmem:[#allocation7 + $0x38] sm:$0xff]  ;;  %v1212_v40 = vld [vmem:[%s2271_s5] ss:$0 sm:$0xff] }
  0xb7   : > { %v393_v39 = vld [vmem:[#allocation7 + $0x78] sm:$0xff] }
  0xb8   : > { %1471 = vmatpush3.bf16.msra.mxu0 %v1468_v8  ;;  %1534 = vmatpush3.bf16.msra.mxu1 %v1468_v8 }
  0xb9   : > { %1473 = vmatprep.subr.bf16.mxu0 %v1472_v13  ;;  %1527 = vmatprep.subr.bf16.mxu1 %v1472_v13 }
  0xbc   : > { %1475 = vmatpush3.bf16.msra.mxu0 %v1472_v13  ;;  %1535 = vmatpush3.bf16.msra.mxu1 %v1472_v13 }
  0xbd   : > { %1477 = vmatprep.subr.bf16.mxu0 %v1476_v16  ;;  %1528 = vmatprep.subr.bf16.mxu1 %v1476_v16 }
  0xc0   : > { %1479 = vmatpush3.bf16.msra.mxu0 %v1476_v16  ;;  %1536 = vmatpush3.bf16.msra.mxu1 %v1476_v16 }
  0xc1   : > { %1481 = vmatprep.subr.bf16.mxu0 %v1480_v19  ;;  %1529 = vmatprep.subr.bf16.mxu1 %v1480_v19 }
  0xc4   : > { %1483 = vmatpush3.bf16.msra.mxu0 %v1480_v19  ;;  %1537 = vmatpush3.bf16.msra.mxu1 %v1480_v19 }
  0xc5   : > { %1485 = vmatprep.subr.bf16.mxu0 %v1484_v22  ;;  %1530 = vmatprep.subr.bf16.mxu1 %v1484_v22 }
  0xc8   : > { %1487 = vmatpush3.bf16.msra.mxu0 %v1484_v22  ;;  %1538 = vmatpush3.bf16.msra.mxu1 %v1484_v22 }
  0xc9   : > { %1489 = vmatprep.subr.bf16.mxu0 %v1488_v25  ;;  %1531 = vmatprep.subr.bf16.mxu1 %v1488_v25 }
  0xcc   : > { %1491 = vmatpush3.bf16.msra.mxu0 %v1488_v25  ;;  %1539 = vmatpush3.bf16.msra.mxu1 %v1488_v25 }
  0xcf   : > { %1349 = vmatmul.mubr.f32.vlgmr.msra.gmra.mrb[0].mxu0 %v379_v26  ;;  %1361 = vmatmul.mubr.f32.vlgmr.msra.gmra.mrb[0].mxu1 %v387_v27 }
  0xd0   : > { %1351 = vmatprep.mubr.f32.mxu0 %v380_v28  ;;  %1363 = vmatprep.mubr.f32.mxu1 %v388_v29 }
  0xd3   : > { %1352 = vmatmul.mubr.f32.gmra.mrb[2].mxu0 %v381_v30  ;;  %1364 = vmatmul.mubr.f32.gmra.mrb[2].mxu1 %v389_v31 }
  0xd4   : > { %1354 = vmatprep.mubr.f32.mxu0 %v382_v32  ;;  %1366 = vmatprep.mubr.f32.mxu1 %v390_v33 }
  0xd7   : > { %1355 = vmatmul.mubr.f32.gmra.mrb[4].mxu0 %v383_v34  ;;  %1367 = vmatmul.mubr.f32.gmra.mrb[4].mxu1 %v391_v35 }
  0xd8   : > { %1357 = vmatprep.mubr.f32.mxu0 %v384_v36  ;;  %1369 = vmatprep.mubr.f32.mxu1 %v392_v37 }
  0xdb   : > { %1358 = vmatmul.mubr.f32.gmra.mrb[6].mxu0 %v385_v38  ;;  %1370 = vmatmul.mubr.f32.gmra.mrb[6].mxu1 %v393_v39 }
 0x1a2   : > { %v1350_v41 = vpop.f32.mrb[0].mxu0  ;;  %v1362_v42 = vpop.f32.mrb[0].mxu1 }
 0x1a3   : > { %v489_v43 = vadd.f32 %v1350_v41, %v1212_v40  ;;  %v529_v44 = vadd.f32 %v1362_v42, %v1212_v40  ;;  %v483_v45 = vpop.f32.mrb[1].mxu0  ;;  %v523_v46 = vpop.f32.mrb[1].mxu1 }
 0x1a4   : > { %v484_v47 = vadd.f32 %v1212_v40, %v483_v45  ;;  %v524_v48 = vadd.f32 %v1212_v40, %v523_v46 }
 0x1a5   : > { %563 = vst [vmem:[#allocation11 + $0x8] sm:$0xff] %v489_v43  ;;  %571 = vst [vmem:[#allocation11 + $0x48] sm:$0xff] %v529_v44 }
 0x1a6   : > { %562 = vst [vmem:[#allocation11] sm:$0xff] %v484_v47  ;;  %570 = vst [vmem:[#allocation11 + $0x40] sm:$0xff] %v524_v48  ;;  %v1353_v49 = vpop.f32.mrb[2].mxu0  ;;  %v1365_v50 = vpop.f32.mrb[2].mxu1 }
 0x1a7   : > { %v499_v51 = vadd.f32 %v1353_v49, %v1212_v40  ;;  %v539_v52 = vadd.f32 %v1365_v50, %v1212_v40  ;;  %v493_v53 = vpop.f32.mrb[3].mxu0  ;;  %v533_v54 = vpop.f32.mrb[3].mxu1 }
 0x1a8   : > { %v494_v55 = vadd.f32 %v1212_v40, %v493_v53  ;;  %v534_v56 = vadd.f32 %v1212_v40, %v533_v54 }
 0x1a9   : > { %565 = vst [vmem:[#allocation11 + $0x18] sm:$0xff] %v499_v51  ;;  %573 = vst [vmem:[#allocation11 + $0x58] sm:$0xff] %v539_v52 }
 0x1aa   : > { %564 = vst [vmem:[#allocation11 + $0x10] sm:$0xff] %v494_v55  ;;  %572 = vst [vmem:[#allocation11 + $0x50] sm:$0xff] %v534_v56  ;;  %v1356_v57 = vpop.f32.mrb[4].mxu0  ;;  %v1368_v58 = vpop.f32.mrb[4].mxu1 }
 0x1ab   : > { %v509_v59 = vadd.f32 %v1356_v57, %v1212_v40  ;;  %v549_v60 = vadd.f32 %v1368_v58, %v1212_v40  ;;  %v503_v61 = vpop.f32.mrb[5].mxu0  ;;  %v543_v62 = vpop.f32.mrb[5].mxu1 }
 0x1ac   : > { %v504_v63 = vadd.f32 %v1212_v40, %v503_v61  ;;  %v544_v0 = vadd.f32 %v1212_v40, %v543_v62 }
 0x1ad   : > { %567 = vst [vmem:[#allocation11 + $0x28] sm:$0xff] %v509_v59  ;;  %575 = vst [vmem:[#allocation11 + $0x68] sm:$0xff] %v549_v60 }
 0x1ae   : > { %566 = vst [vmem:[#allocation11 + $0x20] sm:$0xff] %v504_v63  ;;  %574 = vst [vmem:[#allocation11 + $0x60] sm:$0xff] %v544_v0  ;;  %v1359_v1 = vpop.f32.mrb[6].mxu0  ;;  %v1371_v2 = vpop.f32.mrb[6].mxu1 }
 0x1af   : > { %v519_v3 = vadd.f32 %v1359_v1, %v1212_v40  ;;  %v559_v4 = vadd.f32 %v1371_v2, %v1212_v40  ;;  %v513_v5 = vpop.f32.mrb[7].mxu0  ;;  %v553_v6 = vpop.f32.mrb[7].mxu1 }
 0x1b0   : > { %v514_v7 = vadd.f32 %v1212_v40, %v513_v5  ;;  %v554_v8 = vadd.f32 %v1212_v40, %v553_v6 }
 0x1b1   : > { %569 = vst [vmem:[#allocation11 + $0x38] sm:$0xff] %v519_v3  ;;  %577 = vst [vmem:[#allocation11 + $0x78] sm:$0xff] %v559_v4 }
 0x1b2   : > { %568 = vst [vmem:[#allocation11 + $0x30] sm:$0xff] %v514_v7  ;;  %576 = vst [vmem:[#allocation11 + $0x70] sm:$0xff] %v554_v8 }
 0x1b3 PF: > { %v1644_v9 = vld [vmem:[#allocation5] sm:$0xff]   ;;  %v1645_v10 = vld [vmem:[#allocation5 + $0x8] sm:$0xff]   ;;  %v1646_v11 = vld [vmem:[#allocation5 + $0x10] sm:$0xff]   ;;  %p1229_p13 = scmp.ne.s32.totalorder %s1888_s24, 1 }
 0x1b4   : > { %1372 = vmatprep.subr.bf16.mxu0 %v1644_v9  ;;  %v1647_v12 = vld [vmem:[#allocation5 + $0x18] sm:$0xff]   ;;  %v1652_v13 = vld [vmem:[%s2175_s21] sm:$0xff]   ;;  %v1649_v15 = vld [vmem:[#allocation5 + $0x28] sm:$0xff]  }
 0x1b5   : > { %1373 = vmatpush3.bf16.msra.mxu0 %v1644_v9  ;;  %1388 = vmatprep.mubr.bf16.mxu0 %v1652_v13  ;;  %v1648_v14 = vld [vmem:[#allocation5 + $0x20] sm:$0xff]   ;;  %v820_v17 = vld [vmem:[%s2186_s17 + $0x8] sm:$0xff]  ;;  %v821_v18 = vld [vmem:[%s2186_s17 + $0x10] sm:$0xff] }
 0x1b6   : > { %1374 = vmatprep.subr.bf16.mxu0 %v1645_v10  ;;  %v819_v16 = vld [vmem:[%s2186_s17] sm:$0xff]  ;;  %v822_v20 = vld [vmem:[%s2186_s17 + $0x18] sm:$0xff]  ;;  %v824_v23 = vld [vmem:[%s2186_s17 + $0x28] sm:$0xff] }
 0x1b7   : > { %v1492_v19 = vpack.c.bf16 %v820_v17, %v819_v16  ;;  %v1496_v21 = vpack.c.bf16 %v822_v20, %v821_v18  ;;  %v823_v22 = vld [vmem:[%s2186_s17 + $0x20] sm:$0xff]  ;;  %v1650_v24 = vld [vmem:[#allocation5 + $0x30] sm:$0xff]   ;;  %v826_v27 = vld [vmem:[%s2186_s17 + $0x38] sm:$0xff] }
 0x1b8   : > { %v1500_v25 = vpack.c.bf16 %v824_v23, %v823_v22  ;;  %v825_v26 = vld [vmem:[%s2186_s17 + $0x30] sm:$0xff]  ;;  %v1651_v28 = vld [vmem:[#allocation5 + $0x38] sm:$0xff]   ;;  %v827_v30 = vld [vmem:[%s2186_s17 + $0x40] sm:$0xff] }
 0x1b9   : > { %1375 = vmatpush3.bf16.msra.mxu0 %v1645_v10  ;;  %1493 = vmatprep.subr.bf16.mxu1 %v1492_v19  ;;  %v1504_v29 = vpack.c.bf16 %v826_v27, %v825_v26  ;;  %v828_v31 = vld [vmem:[%s2186_s17 + $0x48] sm:$0xff]  ;;  %v829_v34 = vld [vmem:[%s2186_s17 + $0x50] sm:$0xff]  ;;  %v830_v35 = vld [vmem:[%s2186_s17 + $0x58] sm:$0xff] }
 0x1ba   : > { %1376 = vmatprep.subr.bf16.mxu0 %v1646_v11  ;;  %1495 = vmatpush3.bf16.msra.mxu1 %v1492_v19  ;;  %v1508_v32 = vpack.c.bf16 %v828_v31, %v827_v30  ;;  %v1653_v33 = vld [vmem:[%s2175_s21 + $0x8] sm:$0xff]   ;;  %v1654_v36 = vld [vmem:[%s2175_s21 + $0x10] sm:$0xff]   ;;  %v1512_v37 = vpack.c.bf16 %v830_v35, %v829_v34  ;;  %v831_v38 = vld [vmem:[%s2186_s17 + $0x60] sm:$0xff] }
 0x1bb   : > { %1497 = vmatprep.subr.bf16.mxu1 %v1496_v21  ;;  %v832_v39 = vld [vmem:[%s2186_s17 + $0x68] sm:$0xff]  ;;  %v1655_v41 = vld [vmem:[%s2175_s21 + $0x18] sm:$0xff]   ;;  %v1656_v42 = vld [vmem:[%s2175_s21 + $0x20] sm:$0xff]  }
 0x1bc   : > { %v1516_v40 = vpack.c.bf16 %v832_v39, %v831_v38  ;;  %v1657_v43 = vld [vmem:[%s2175_s21 + $0x28] sm:$0xff]   ;;  %v1658_v44 = vld [vmem:[%s2175_s21 + $0x30] sm:$0xff]   ;;  %v1659_v45 = vld [vmem:[%s2175_s21 + $0x38] sm:$0xff]  }
 0x1bd   : > { %1377 = vmatpush3.bf16.msra.mxu0 %v1646_v11  ;;  %v833_v46 = vld [vmem:[%s2186_s17 + $0x70] sm:$0xff]  ;;  %v834_v47 = vld [vmem:[%s2186_s17 + $0x78] sm:$0xff]  ;;  %v804_v1 = vld [vmem:[#allocation11 + $0x8] sm:$0xff] }
 0x1be   : > { %1378 = vmatprep.subr.bf16.mxu0 %v1647_v12  ;;  %1499 = vmatpush3.bf16.msra.mxu1 %v1496_v21  ;;  %v1520_v48 = vpack.c.bf16 %v834_v47, %v833_v46  ;;  %v803_v2 = vld [vmem:[#allocation11] sm:$0xff]  ;;  %v806_v7 = vld [vmem:[#allocation11 + $0x18] sm:$0xff]  ;;  %v805_v8 = vld [vmem:[#allocation11 + $0x10] sm:$0xff] }
 0x1bf   : > { %1501 = vmatprep.subr.bf16.mxu1 %v1500_v25  ;;  %v808_v13 = vld [vmem:[#allocation11 + $0x28] sm:$0xff]  ;;  %v810_v19 = vld [vmem:[#allocation11 + $0x38] sm:$0xff]  ;;  %v809_v20 = vld [vmem:[#allocation11 + $0x30] sm:$0xff] }
 0x1c0   : > { %v811_v26 = vld [vmem:[#allocation11 + $0x40] sm:$0xff]  ;;  %v814_v31 = vld [vmem:[#allocation11 + $0x58] sm:$0xff] }
 0x1c1   : > { %1379 = vmatpush3.bf16.msra.mxu0 %v1647_v12  ;;  %v815_v38 = vld [vmem:[#allocation11 + $0x60] sm:$0xff] }
 0x1c2   : > { %1380 = vmatprep.subr.bf16.mxu0 %v1648_v14  ;;  %1503 = vmatpush3.bf16.msra.mxu1 %v1500_v25  ;;  %v812_v25 = vld [vmem:[#allocation11 + $0x48] sm:$0xff] }
 0x1c3   : > { %1505 = vmatprep.subr.bf16.mxu1 %v1504_v29 }
 0x1c5   : > { %1381 = vmatpush3.bf16.msra.mxu0 %v1648_v14  ;;  %v807_v14 = vld [vmem:[#allocation11 + $0x20] sm:$0xff] }
 0x1c6   : > { %1382 = vmatprep.subr.bf16.mxu0 %v1649_v15  ;;  %1507 = vmatpush3.bf16.msra.mxu1 %v1504_v29 }
 0x1c7   : > { %1509 = vmatprep.subr.bf16.mxu1 %v1508_v32 }
 0x1c9   : > { %1383 = vmatpush3.bf16.msra.mxu0 %v1649_v15 }
 0x1ca   : > { %1384 = vmatprep.subr.bf16.mxu0 %v1650_v24  ;;  %1511 = vmatpush3.bf16.msra.mxu1 %v1508_v32  ;;  %v813_v32 = vld [vmem:[#allocation11 + $0x50] sm:$0xff] }
 0x1cb   : > { %1513 = vmatprep.subr.bf16.mxu1 %v1512_v37 }
 0x1cd   : > { %1385 = vmatpush3.bf16.msra.mxu0 %v1650_v24 }
 0x1ce   : > { %1386 = vmatprep.subr.bf16.mxu0 %v1651_v28  ;;  %1515 = vmatpush3.bf16.msra.mxu1 %v1512_v37  ;;  %v816_v37 = vld [vmem:[#allocation11 + $0x68] sm:$0xff] }
 0x1cf   : > { %1517 = vmatprep.subr.bf16.mxu1 %v1516_v40 }
 0x1d1   : > { %1387 = vmatpush3.bf16.msra.mxu0 %v1651_v28 }
 0x1d2   : > { %1519 = vmatpush3.bf16.msra.mxu1 %v1516_v40 }
 0x1d3   : > { %1521 = vmatprep.subr.bf16.mxu1 %v1520_v48 }
 0x1d4   : > { %1389 = vmatmul.mubr.bf16.vlgmr.msra.gmra.mrb[0].mxu0 %v1653_v33 }
 0x1d5   : > { %1392 = vmatprep.mubr.bf16.mxu0 %v1654_v36 }
 0x1d6   : > { %1523 = vmatpush3.bf16.msra.mxu1 %v1520_v48 }
 0x1dc   : > { %1393 = vmatmul.mubr.bf16.gmra.mrb[4].mxu0 %v1655_v41 }
 0x1dd   : > { %1396 = vmatprep.mubr.bf16.mxu0 %v1656_v42 }
 0x1e4   : > { %1397 = vmatmul.mubr.bf16.gmra.mrb[8].mxu0 %v1657_v43  ;;  %v818_v43 = vld [vmem:[#allocation11 + $0x78] sm:$0xff] }
 0x1e5   : > { %1400 = vmatprep.mubr.bf16.mxu0 %v1658_v44  ;;  %v817_v44 = vld [vmem:[#allocation11 + $0x70] sm:$0xff] }
 0x1ec   : > { %1401 = vmatmul.mubr.bf16.gmra.mrb[12].mxu0 %v1659_v45 }
 0x2a7   : > { %v1390_v49 = vpop.f32.mrb[0].mxu0 }
 0x2a8   : > { %v740_v50 = vpop.f32.mrb[1].mxu0 }
 0x2a9   : > { %v1391_v51 = vpop.f32.mrb[2].mxu0  ;;  %1436 = vmatprep.mubr.f32.mxu1 %v740_v50 }
 0x2aa   : > { %v743_v52 = vpop.f32.mrb[3].mxu0 }
 0x2ab   : > { %1437 = vmatmul.mubr.f32.vlgmr.msra.gmra.mrb[0].mxu1 %v743_v52 }
 0x2ac   : > { %1439 = vmatprep.mubr.f32.mxu1 %v1390_v49 }
 0x2af   : > { %v1394_v53 = vpop.f32.mrb[4].mxu0  ;;  %1440 = vmatmul.mubr.f32.gmra.mrb[2].mxu1 %v1391_v51 }
 0x2b0   : > { %v756_v54 = vpop.f32.mrb[5].mxu0 }
 0x2b1   : > { %v1395_v55 = vpop.f32.mrb[6].mxu0  ;;  %1442 = vmatprep.mubr.f32.mxu1 %v756_v54 }
 0x2b2   : > { %v759_v56 = vpop.f32.mrb[7].mxu0 }
 0x2b3   : > { %1443 = vmatmul.mubr.f32.gmra.mrb[4].mxu1 %v759_v56 }
 0x2b4   : > { %1445 = vmatprep.mubr.f32.mxu1 %v1394_v53 }
 0x2b7   : > { %v1398_v57 = vpop.f32.mrb[8].mxu0  ;;  %1446 = vmatmul.mubr.f32.gmra.mrb[6].mxu1 %v1395_v55 }
 0x2b8   : > { %v772_v58 = vpop.f32.mrb[9].mxu0 }
 0x2b9   : > { %v1399_v59 = vpop.f32.mrb[10].mxu0  ;;  %1448 = vmatprep.mubr.f32.mxu1 %v772_v58 }
 0x2ba   : > { %v775_v60 = vpop.f32.mrb[11].mxu0 }
 0x2bb   : > { %1449 = vmatmul.mubr.f32.gmra.mrb[8].mxu1 %v775_v60 }
 0x2bc   : > { %1451 = vmatprep.mubr.f32.mxu1 %v1398_v57 }
 0x2bf   : > { %v1402_v61 = vpop.f32.mrb[12].mxu0  ;;  %1452 = vmatmul.mubr.f32.gmra.mrb[10].mxu1 %v1399_v59 }
 0x2c0   : > { %v788_v62 = vpop.f32.mrb[13].mxu0 }
 0x2c1   : > { %v1403_v63 = vpop.f32.mrb[14].mxu0  ;;  %1454 = vmatprep.mubr.f32.mxu1 %v788_v62 }
 0x2c2   : > { %v791_v0 = vpop.f32.mrb[15].mxu0 }
 0x2c3   : > { %1455 = vmatmul.mubr.f32.gmra.mrb[12].mxu1 %v791_v0 }
 0x2c4   : > { %1457 = vmatprep.mubr.f32.mxu1 %v1402_v61 }
 0x2c7   : > { %1458 = vmatmul.mubr.f32.gmra.mrb[14].mxu1 %v1403_v63 }
 0x37e   : > { %v1438_v3 = vpop.f32.mrb[0].mxu1 }
 0x37f   : > { %v981_v4 = vadd.f32 %v1438_v3, %v804_v1  ;;  %v901_v5 = vpop.f32.mrb[1].mxu1 }
 0x380   : > { %v980_v6 = vadd.f32 %v901_v5, %v803_v2 }
 0x381   : > { %997 = vst [vmem:[#allocation11 + $0x8] sm:$0xff] %v981_v4 }
 0x382   : > { %996 = vst [vmem:[#allocation11] sm:$0xff] %v980_v6  ;;  %v1441_v9 = vpop.f32.mrb[2].mxu1 }
 0x383   : > { %v983_v10 = vadd.f32 %v1441_v9, %v806_v7  ;;  %v911_v11 = vpop.f32.mrb[3].mxu1 }
 0x384   : > { %v982_v12 = vadd.f32 %v911_v11, %v805_v8 }
 0x385   : > { %999 = vst [vmem:[#allocation11 + $0x18] sm:$0xff] %v983_v10 }
 0x386   : > { %998 = vst [vmem:[#allocation11 + $0x10] sm:$0xff] %v982_v12  ;;  %v1444_v15 = vpop.f32.mrb[4].mxu1 }
 0x387   : > { %v985_v16 = vadd.f32 %v1444_v15, %v808_v13  ;;  %v921_v17 = vpop.f32.mrb[5].mxu1 }
 0x388   : > { %v984_v18 = vadd.f32 %v921_v17, %v807_v14  ;;  %v1017_v50 = vld [vmem:[#allocation11 + $0x8] sm:$0xff] (!%p1229_p13) }
 0x389   : > { %1001 = vst [vmem:[#allocation11 + $0x28] sm:$0xff] %v985_v16  ;;  %v1016_v49 = vld [vmem:[#allocation11] sm:$0xff] (!%p1229_p13)  ;;  %v1033_v53 = vmax.f32 (!%p1229_p13), %v1017_v50, 0.0 }
 0x38a   : > { %1000 = vst [vmem:[#allocation11 + $0x20] sm:$0xff] %v984_v18  ;;  %v1447_v21 = vpop.f32.mrb[6].mxu1  ;;  %v1032_v52 = vmax.f32 (!%p1229_p13), %v1016_v49, 0.0 }
 0x38b   : > { %v987_v22 = vadd.f32 %v1447_v21, %v810_v19  ;;  %v931_v23 = vpop.f32.mrb[7].mxu1  ;;  %1049 = vst [vmem:[#allocation11 + $0x8] sm:$0xff] (!%p1229_p13), %v1033_v53 }
 0x38c   : > { %v986_v24 = vadd.f32 %v931_v23, %v809_v20  ;;  %v1019_v55 = vld [vmem:[#allocation11 + $0x18] sm:$0xff] (!%p1229_p13)  ;;  %1048 = vst [vmem:[#allocation11] sm:$0xff] (!%p1229_p13), %v1032_v52 }
 0x38d   : > { %1003 = vst [vmem:[#allocation11 + $0x38] sm:$0xff] %v987_v22  ;;  %v1018_v51 = vld [vmem:[#allocation11 + $0x10] sm:$0xff] (!%p1229_p13)  ;;  %v1035_v58 = vmax.f32 (!%p1229_p13), %v1019_v55, 0.0 }
 0x38e   : > { %1002 = vst [vmem:[#allocation11 + $0x30] sm:$0xff] %v986_v24  ;;  %v1450_v27 = vpop.f32.mrb[8].mxu1  ;;  %v1034_v54 = vmax.f32 (!%p1229_p13), %v1018_v51, 0.0 }
 0x38f   : > { %v989_v28 = vadd.f32 %v1450_v27, %v812_v25  ;;  %v941_v29 = vpop.f32.mrb[9].mxu1  ;;  %1051 = vst [vmem:[#allocation11 + $0x18] sm:$0xff] (!%p1229_p13), %v1035_v58 }
 0x390   : > { %v988_v30 = vadd.f32 %v941_v29, %v811_v26  ;;  %v1021_v57 = vld [vmem:[#allocation11 + $0x28] sm:$0xff] (!%p1229_p13)  ;;  %1050 = vst [vmem:[#allocation11 + $0x10] sm:$0xff] (!%p1229_p13), %v1034_v54 }
 0x391   : > { %1005 = vst [vmem:[#allocation11 + $0x48] sm:$0xff] %v989_v28  ;;  %v1020_v56 = vld [vmem:[#allocation11 + $0x20] sm:$0xff] (!%p1229_p13)  ;;  %v1037_v60 = vmax.f32 (!%p1229_p13), %v1021_v57, 0.0 }
 0x392   : > { %1004 = vst [vmem:[#allocation11 + $0x40] sm:$0xff] %v988_v30  ;;  %v1453_v33 = vpop.f32.mrb[10].mxu1  ;;  %v1036_v59 = vmax.f32 (!%p1229_p13), %v1020_v56, 0.0 }
 0x393   : > { %v991_v34 = vadd.f32 %v1453_v33, %v814_v31  ;;  %v951_v35 = vpop.f32.mrb[11].mxu1  ;;  %1053 = vst [vmem:[#allocation11 + $0x28] sm:$0xff] (!%p1229_p13), %v1037_v60 }
 0x394   : > { %v990_v36 = vadd.f32 %v951_v35, %v813_v32  ;;  %v1023_v62 = vld [vmem:[#allocation11 + $0x38] sm:$0xff] (!%p1229_p13)  ;;  %1052 = vst [vmem:[#allocation11 + $0x20] sm:$0xff] (!%p1229_p13), %v1036_v59 }
 0x395   : > { %1007 = vst [vmem:[#allocation11 + $0x58] sm:$0xff] %v991_v34  ;;  %v1022_v61 = vld [vmem:[#allocation11 + $0x30] sm:$0xff] (!%p1229_p13)  ;;  %v1039_v1 = vmax.f32 (!%p1229_p13), %v1023_v62, 0.0 }
 0x396   : > { %1006 = vst [vmem:[#allocation11 + $0x50] sm:$0xff] %v990_v36  ;;  %v1456_v39 = vpop.f32.mrb[12].mxu1  ;;  %v1038_v0 = vmax.f32 (!%p1229_p13), %v1022_v61, 0.0 }
 0x397   : > { %v993_v40 = vadd.f32 %v1456_v39, %v816_v37  ;;  %v961_v41 = vpop.f32.mrb[13].mxu1  ;;  %1055 = vst [vmem:[#allocation11 + $0x38] sm:$0xff] (!%p1229_p13), %v1039_v1 }
 0x398   : > { %v992_v42 = vadd.f32 %v961_v41, %v815_v38  ;;  %1015 = sbr.rel (%p1229_p13) target bundleno = 937 (0x3a9), region = 72  ;;  %v1025_v3 = vld [vmem:[#allocation11 + $0x48] sm:$0xff] (!%p1229_p13)  ;;  %1054 = vst [vmem:[#allocation11 + $0x30] sm:$0xff] (!%p1229_p13), %v1038_v0 }
 0x399   : > { %1009 = vst [vmem:[#allocation11 + $0x68] sm:$0xff] %v993_v40  ;;  %v1024_v63 = vld [vmem:[#allocation11 + $0x40] sm:$0xff] (!%p1229_p13)  ;;  %v1041_v6 = vmax.f32 (!%p1229_p13), %v1025_v3, 0.0 }
 0x39a   : > { %1008 = vst [vmem:[#allocation11 + $0x60] sm:$0xff] %v992_v42  ;;  %v1459_v45 = vpop.f32.mrb[14].mxu1  ;;  %v1040_v2 = vmax.f32 (!%p1229_p13), %v1024_v63, 0.0 }
 0x39b   : > { %v995_v46 = vadd.f32 %v1459_v45, %v818_v43  ;;  %v971_v47 = vpop.f32.mrb[15].mxu1  ;;  %1057 = vst [vmem:[#allocation11 + $0x48] sm:$0xff] (!%p1229_p13), %v1041_v6 }
 0x39c   : > { %v994_v48 = vadd.f32 %v971_v47, %v817_v44  ;;  %v1027_v5 = vld [vmem:[#allocation11 + $0x58] sm:$0xff] (!%p1229_p13)  ;;  %1056 = vst [vmem:[#allocation11 + $0x40] sm:$0xff] (!%p1229_p13), %v1040_v2 }
 0x39d   : > { %1011 = vst [vmem:[#allocation11 + $0x78] sm:$0xff] %v995_v46  ;;  %v1026_v4 = vld [vmem:[#allocation11 + $0x50] sm:$0xff] (!%p1229_p13)  ;;  %v1043_v8 = vmax.f32 (!%p1229_p13), %v1027_v5, 0.0 }
 0x39e   : > { %1010 = vst [vmem:[#allocation11 + $0x70] sm:$0xff] %v994_v48  ;;  %v1042_v7 = vmax.f32 (!%p1229_p13), %v1026_v4, 0.0 }
 0x39f   : > { %1059 = vst [vmem:[#allocation11 + $0x58] sm:$0xff] %v1043_v8 }
 0x3a0   : > { %v1029_v10 = vld [vmem:[#allocation11 + $0x68] sm:$0xff]  ;;  %1058 = vst [vmem:[#allocation11 + $0x50] sm:$0xff] %v1042_v7 }
 0x3a1   : > { %v1028_v9 = vld [vmem:[#allocation11 + $0x60] sm:$0xff]  ;;  %v1045_v13 = vmax.f32 %v1029_v10, 0.0 }
 0x3a2   : > { %v1044_v12 = vmax.f32 %v1028_v9, 0.0 }
 0x3a3   : > { %1061 = vst [vmem:[#allocation11 + $0x68] sm:$0xff] %v1045_v13 }
 0x3a4   : > { %v1031_v15 = vld [vmem:[#allocation11 + $0x78] sm:$0xff]  ;;  %1060 = vst [vmem:[#allocation11 + $0x60] sm:$0xff] %v1044_v12 }
 0x3a5   : > { %v1030_v11 = vld [vmem:[#allocation11 + $0x70] sm:$0xff]  ;;  %v1047_v16 = vmax.f32 %v1031_v15, 0.0 }
 0x3a6   : > { %v1046_v14 = vmax.f32 %v1030_v11, 0.0 }
 0x3a7   : > { %1063 = vst [vmem:[#allocation11 + $0x78] sm:$0xff] %v1047_v16 }
 0x3a8   : > { %1062 = vst [vmem:[#allocation11 + $0x70] sm:$0xff] %v1046_v14 }
 0x3a9 PF: > { %p1584_p2 = scmp.eq.s32.totalorder %s1974_s27, 1  ;;  %s1907_s24 = smov [#allocation11]  }
 0x3aa   : > { %s1073_s8 = sshll.u32 %s1907_s24, 4  ;;  %s1074_s8 = int_to_ptr.vmem [resolvable:$true] %s1073_s8 }
 0x3ab   : > { %s1804_s18 = scalar_lea.vmem %s1074_s8, 2048  ;;  %p1811_p1 = scmp.lt.s32.totalorder %s1074_s8, %s1074_s8 }
 0x3ac   : > { %p1805_p3 = scmp.ne.s32.totalorder %s1074_s8, %s1804_s18  ;;  %p1812_p4 = scmp.lt.s32.totalorder %s1804_s18, %s1804_s18 }
 0x3ae   : > { %p1806_p0 = pnand %p1805_p3, %p1584_p2  ;;  %p1813_p12 = por %p1812_p4, %p1811_p1 }
 0x3b0   : > { %p1807_p6 = pneg %p1806_p0 }
 0x3b2   : > { %p1814_p9 = pnand %p1813_p12, %p1807_p6 }
 0x3b4   : > { %1817 = shalt.err (!%p1814_p9)
}
 0x3b5   : > { %s2298_s12 = sld [smem:[#allocation19_spill]] }
 0x3bb   : > { %s1818_s9 = scalar_lea.hbm %s2298_s12, 2048 }
 0x3bc   : > { %p1819_p5 = scmp.ne.s32.totalorder %s2298_s12, %s1818_s9  ;;  %p1824_p7 = scmp.lt.u32.totalorder %s1818_s9, %s2298_s12 }
 0x3be   : > { %p1820_p10 = pnand %p1819_p5, %p1584_p2 }
 0x3c0   : > { %p1821_p8 = pneg %p1820_p10 }
 0x3c2   : > { %p1826_p11 = pnand %p1824_p7, %p1821_p8 }
 0x3c4   : > { %1829 = shalt.err (!%p1826_p11)
}
 0x3c5   : > { %s1908_s30 = smov 128   ;;  %s1909_s20 = smov 8  }
 0x3c6   : > { %1557 = dma.vmem_to_hbm [thread:$0]  (%p1584_p2), %s1074_s8, 2048, %s2298_s12, [#allocation4], %s1908_s30, %s1908_s30, %s1909_s20  }
 0x3c7   : > { %1871 = dma.done.wait (%p1584_p2), [#allocation4], 2048  }
 0x3c8   : > { %1873 = vsyncadd (%p1584_p2), [#allocation4], 4294965248 }
 0x3c9 PF: > { %s24_s26 = sadd.s32 1, %s1896_s26   ;;  %s2299_s21 = smov %s1880_s22 }
 0x3ca   : > { %p21_p13 = scmp.ge.s32.totalorder %s24_s26, 4   ;;  %s2300_s22 = smov %s1884_s23 }
 0x3cb   : > { %s2301_s23 = smov %s2083_s19  ;;  %s2302_s24 = smov %s1892_s25 }
 0x3cc   : > { %s2303_s25 = smov %s2305_s13  ;;  %23 = sbr.rel (!%p21_p13) target bundleno = 12 (0xc), region = 116 }
 0x3d3   :  { %1089 = vsyncpa [#allocation3], 1 }
 0x3d4   :  { %1091 = vsyncpa [#allocation3 + $0x1], 1 }
 0x3d5   :  { %1092 = vsyncpa [#allocation6], 1 }
 0x3d6   :  { %1093 = vsyncpa [#allocation9], 1 }
 0x3d7   :  { %1095 = vsyncpa [#allocation9 + $0x1], 1 }
 0x3d8   :  { %1096 = vsyncpa [#allocation4], 1 }
 0x3d9   :  { %1098 = vsyncpa [#allocation4 + $0x1], 1 }

</bundles_post_ra>
